<compile_context>
chip_gen: v6e
topology: v6e:2x2x1
jax: 0.10.0
libtpu: 0.0.40
codegen_flags: <defaults>
</compile_context>

<pallas_src>
import jax
import jax.numpy as jnp
from jax.experimental import pallas as pl
from jax.experimental.pallas import tpu as pltpu

IN_F = 85
H1 = 180
N_NODES = 240          # out_features of hidden_layer_2 = number of GCN nodes

H1_PAD = 256           # 180 -> 256 (lane-aligned)
N_PAD = 256            # 240 -> 256 (lane-dense output width)

MAX_TB = 2048          # max batch-rows per grid step


def _round_up(x, m):
    return (x + m - 1) // m * m


def _act_dtype():
    """bf16 tanh/bias on v6e/v7x (bf16 VPU/EUP path); f32 on v5e and older."""
    try:
        kind = jax.devices()[0].device_kind.lower()
    except Exception:
        kind = ""
    old = any(t in kind for t in ("v2", "v3", "v4", "v5"))
    return jnp.float32 if old else jnp.bfloat16


# ----------------------------- Pallas kernel ------------------------------ #
def _make_kernel(act_dtype):
    def decoder_kernel(x_ref, w1_ref, b1_ref, w2_ref, b2_ref, ahat_t_ref,
                       bg_ref, out_ref):
        # x_ref: (TB, 85) f32 -> cast to bf16 in-kernel (no wrapper pad/cast).
        x = x_ref[...].astype(jnp.bfloat16)
        h1 = (jnp.dot(x, w1_ref[...], preferred_element_type=jnp.float32)
              + b1_ref[...])
        h1 = jnp.tanh(h1.astype(act_dtype))                      # (TB, 256)
        # dp_1 / dp_2: Dropout(p=0.2) is identity in eval mode.
        h2 = (jnp.dot(h1.astype(jnp.bfloat16), w2_ref[...],
                      preferred_element_type=jnp.float32)
              + b2_ref[...])
        h2 = jnp.tanh(h2.astype(act_dtype))                      # (TB, 256)
        # GCNConv(1, 1): g[b, i] = sum_j A_hat[i, j] * w_g * h2[b, j] + b_g
        # (w_g already folded into ahat_t = (w_g * A_hat)^T, zero-padded).
        g = (jnp.dot(h2.astype(jnp.bfloat16), ahat_t_ref[...],
                     preferred_element_type=jnp.float32)
             + bg_ref[...])                                      # (TB, 256) f32
        out_ref[...] = g

    return decoder_kernel


# --------------------------- host-side param prep -------------------------- #
def prepare_params(w1, b1, w2, b2, wg, bg, ahat):
    """Pad / cast / fold once (outside the per-call jitted forward path)."""
    # w1 keeps K=85 (matches the unpadded x block); only the output dim is padded.
    w1p = jnp.zeros((IN_F, H1_PAD), jnp.float32).at[:, :H1].set(w1)
    b1p = jnp.zeros((1, H1_PAD), jnp.float32).at[:, :H1].set(b1)
    w2p = jnp.zeros((H1_PAD, N_PAD), jnp.float32).at[:H1, :N_NODES].set(w2)
    b2p = jnp.zeros((1, N_PAD), jnp.float32).at[:, :N_NODES].set(b2)
    # Fold the 1x1 GCN weight into the adjacency and pre-transpose it.
    ahat_t = (wg[0] * ahat).T
    ahat_tp = jnp.zeros((N_PAD, N_PAD), jnp.float32).at[:N_NODES, :N_NODES].set(ahat_t)
    bgv = jnp.zeros((1, N_PAD), jnp.float32).at[:, :N_NODES].set(bg[0])
    return (w1p.astype(jnp.bfloat16), b1p,
            w2p.astype(jnp.bfloat16), b2p,
            ahat_tp.astype(jnp.bfloat16), bgv)


# ------------------------------ JAX wrapper -------------------------------- #
@jax.jit
def decoder_forward(x, w1p, b1p, w2p, b2p, ahat_tp, bgv):
    B, C, F = x.shape
    if C != 1 or F != IN_F:
        raise ValueError(
            f"expected input of shape (B, 1, {IN_F}); got {x.shape} "
            "(GCNConv has in_channels=1)")
    rows = B * C

    # Batch tiling: big tiles (amortize ~0.35us/step grid overhead), but keep
    # >= 2 grid steps for larger batches so v7x megacore shards the batch.
    if rows > 1024:
        n_tiles = max(2, -(-rows // MAX_TB))
        TB = min(MAX_TB, _round_up(-(-rows // n_tiles), 16))
    else:
        TB = _round_up(rows, 16)
    rows_pad = _round_up(rows, TB)
    grid = (rows_pad // TB,)

    # Only pad the row count; keep feature dim at 85 and dtype f32 (cast in-kernel).
    x2 = x.reshape(rows, IN_F)
    if rows_pad != rows:
        x2 = jnp.pad(x2, ((0, rows_pad - rows), (0, 0)))

    flops = 2 * rows_pad * (IN_F * H1_PAD + H1_PAD * N_PAD + N_PAD * N_PAD)
    transcendentals = rows_pad * (H1_PAD + N_PAD)
    bytes_accessed = (rows_pad * IN_F * 4
                      + (w1p.size + w2p.size + ahat_tp.size) * 2
                      + (b1p.size + b2p.size + bgv.size) * 4
                      + rows_pad * N_PAD * 4)

    full = lambda i: (0, 0)     # weights stay VMEM-resident across grid steps
    tile = lambda i: (i, 0)     # activations pipelined over the batch grid

    kernel = _make_kernel(_act_dtype())

    out2 = pl.pallas_call(
        kernel,
        out_shape=jax.ShapeDtypeStruct((rows_pad, N_PAD), jnp.float32),
        grid_spec=pltpu.PrefetchScalarGridSpec(
            num_scalar_prefetch=0,
            grid=grid,
            in_specs=[
                pl.BlockSpec((TB, IN_F), tile),          # x (f32, K=85)
                pl.BlockSpec((IN_F, H1_PAD), full),      # w1 (bf16)
                pl.BlockSpec((1, H1_PAD), full),         # b1 (f32)
                pl.BlockSpec((H1_PAD, N_PAD), full),     # w2 (bf16)
                pl.BlockSpec((1, N_PAD), full),          # b2 (f32)
                pl.BlockSpec((N_PAD, N_PAD), full),      # (wg * A_hat)^T (bf16)
                pl.BlockSpec((1, N_PAD), full),          # bg row (f32)
            ],
            out_specs=pl.BlockSpec((TB, N_PAD), tile),
        ),
        compiler_params=pltpu.CompilerParams(
            dimension_semantics=("parallel",),
            vmem_limit_bytes=48 * 1024 * 1024),
        cost_estimate=pl.CostEstimate(
            flops=flops, transcendentals=transcendentals,
            bytes_accessed=bytes_accessed),
    )(x2, w1p, b1p, w2p, b2p, ahat_tp, bgv)

    x_out = out2[:rows, :N_NODES].reshape(B, C, N_NODES)
    return {'x_input': x, 'x_output': x_out}


# --------------------------- glue / param setup ---------------------------- #
def build_gcn_norm_adj(edge_index, num_nodes):
    """Dense A_hat = D^{-1/2} (A + I) D^{-1/2} as used by torch_geometric GCNConv."""
    src, tgt = edge_index
    loop = jnp.arange(num_nodes, dtype=src.dtype)
    src = jnp.concatenate([src, loop])
    tgt = jnp.concatenate([tgt, loop])
    ones = jnp.ones(src.shape[0], dtype=jnp.float32)
    deg = jnp.zeros((num_nodes,), jnp.float32).at[tgt].add(ones)
    dinv = jnp.where(deg > 0, 1.0 / jnp.sqrt(deg), 0.0)
    w = dinv[src] * dinv[tgt]
    # out[i] = sum over edges (src=j -> tgt=i) of w * x[j]  =>  A_hat[i, j]
    ahat = jnp.zeros((num_nodes, num_nodes), jnp.float32).at[tgt, src].add(w)
    return ahat


def init_params(key):
    """Deterministic synthetic params (PyTorch-default-style uniform init)."""
    k1, k2, k3, k4, k5, k6 = jax.random.split(key, 6)
    lim1 = 1.0 / jnp.sqrt(IN_F)
    lim2 = 1.0 / jnp.sqrt(H1)
    w1 = jax.random.uniform(k1, (IN_F, H1), jnp.float32, -lim1, lim1)
    b1 = jax.random.uniform(k2, (1, H1), jnp.float32, -lim1, lim1)
    w2 = jax.random.uniform(k3, (H1, N_NODES), jnp.float32, -lim2, lim2)
    b2 = jax.random.uniform(k4, (1, N_NODES), jnp.float32, -lim2, lim2)
    wg = jax.random.uniform(k5, (1,), jnp.float32, -1.0, 1.0)  # GCN weight (1x1)
    bg = jax.random.uniform(k6, (1,), jnp.float32, -1.0, 1.0)  # GCN bias  (1,)
    return w1, b1, w2, b2, wg, bg


def reference_forward(x, w1, b1, w2, b2, wg, bg, ahat):
    """Pure-JAX f32 reference of the PyTorch eval-mode forward."""
    h1 = jnp.tanh(x @ w1 + b1)
    h2 = jnp.tanh(h1 @ w2 + b2)                     # (B, 1, 240)
    hp = jnp.transpose(h2, (0, 2, 1))               # (B, 240, 1)
    g = jnp.einsum('ij,bjf->bif', ahat, hp * wg[0]) + bg[0]
    return jnp.transpose(g, (0, 2, 1))              # (B, 1, 240)


if __name__ == "__main__":
    key = jax.random.PRNGKey(0)
    kx, kp = jax.random.split(key)

    # Small batch; middle dim must be 1 (GCNConv in_channels=1).
    B, C = 4, 1
    x = jax.random.normal(kx, (B, C, IN_F), jnp.float32)

    w1, b1, w2, b2, wg, bg = init_params(kp)

    # Deterministic edge_index: bidirectional ring over the 240 nodes.
    idx = jnp.arange(N_NODES, dtype=jnp.int32)
    nxt = (idx + 1) % N_NODES
    edge_index = jnp.stack([jnp.concatenate([idx, nxt]),
                            jnp.concatenate([nxt, idx])], axis=0)  # (2, 2*240)
    ahat = build_gcn_norm_adj(edge_index, N_NODES)

    # One-time host-side prep (padding, bf16 cast, wg fold, transpose).
    params = prepare_params(w1, b1, w2, b2, wg, bg, ahat)

    out = decoder_forward(x, *params)
    jax.block_until_ready(out)

    ref = reference_forward(x, w1, b1, w2, b2, wg, bg, ahat)
    assert out['x_output'].shape == (B, C, N_NODES)
    assert jnp.allclose(out['x_input'], x)
    # bf16 matmul inputs / bf16 tanh path (f32 accumulation) => looser tolerance
    # vs the pure-f32 reference; deliberate accuracy/throughput trade-off.
    err = float(jnp.max(jnp.abs(out['x_output'] - ref)))
    assert jnp.allclose(out['x_output'], ref, atol=1e-1, rtol=1e-1), err

    print("KERNEL_OK")
</pallas_src>

<mosaic_0001>
module attributes {stable_mosaic.version = 11 : i64} {
  func.func @decoder_kernel(%arg0: i32, %arg1: memref<16x85xf32, #tpu.memory_space<vmem>>, %arg2: memref<85x256xbf16, #tpu.memory_space<vmem>>, %arg3: memref<1x256xf32, #tpu.memory_space<vmem>>, %arg4: memref<256x256xbf16, #tpu.memory_space<vmem>>, %arg5: memref<1x256xf32, #tpu.memory_space<vmem>>, %arg6: memref<256x256xbf16, #tpu.memory_space<vmem>>, %arg7: memref<1x256xf32, #tpu.memory_space<vmem>>, %arg8: memref<16x256xf32, #tpu.memory_space<vmem>>) attributes {dimension_semantics = [#tpu.dimension_semantics<parallel>], iteration_bounds = array<i64: 1>, scalar_prefetch = 0 : i64, scratch_operands = 0 : i64, tpu.core_type = #tpu.core_type<tc>, window_params = [{transform_indices = @transform_0, window_bounds = array<i64: 16, 85>}, {pipeline_mode = #tpu.pipeline_mode<synchronous>, transform_indices = @transform_1, window_bounds = array<i64: 85, 256>}, {pipeline_mode = #tpu.pipeline_mode<synchronous>, transform_indices = @transform_2, window_bounds = array<i64: 1, 256>}, {pipeline_mode = #tpu.pipeline_mode<synchronous>, transform_indices = @transform_3, window_bounds = array<i64: 256, 256>}, {pipeline_mode = #tpu.pipeline_mode<synchronous>, transform_indices = @transform_4, window_bounds = array<i64: 1, 256>}, {pipeline_mode = #tpu.pipeline_mode<synchronous>, transform_indices = @transform_5, window_bounds = array<i64: 256, 256>}, {pipeline_mode = #tpu.pipeline_mode<synchronous>, transform_indices = @transform_6, window_bounds = array<i64: 1, 256>}, {transform_indices = @transform_7, window_bounds = array<i64: 16, 256>}]} {
    %c0 = arith.constant 0 : index
    %c0_0 = arith.constant 0 : index
    %0 = vector.load %arg1[%c0, %c0_0] : memref<16x85xf32, #tpu.memory_space<vmem>>, vector<16x85xf32>
    %1 = arith.truncf %0 : vector<16x85xf32> to vector<16x85xbf16>
    %c0_1 = arith.constant 0 : index
    %c0_2 = arith.constant 0 : index
    %2 = vector.load %arg2[%c0_1, %c0_2] : memref<85x256xbf16, #tpu.memory_space<vmem>>, vector<85x256xbf16>
    %cst = arith.constant dense<0.000000e+00> : vector<16x256xf32>
    %3 = tpu.matmul %1, %2, %cst {dimension_numbers = #tpu.dot_dimension_numbers<[1], [0], [0], [1], [0, 0, 1, 1], [], []>} : vector<16x85xbf16>, vector<85x256xbf16>, vector<16x256xf32> -> vector<16x256xf32>
    %c0_3 = arith.constant 0 : index
    %c0_4 = arith.constant 0 : index
    %4 = vector.load %arg3[%c0_3, %c0_4] : memref<1x256xf32, #tpu.memory_space<vmem>>, vector<1x256xf32>
    %5 = vector.broadcast %4 : vector<1x256xf32> to vector<16x256xf32>
    %6 = arith.addf %3, %5 : vector<16x256xf32>
    %7 = arith.truncf %6 : vector<16x256xf32> to vector<16x256xbf16>
    %8 = math.tanh %7 : vector<16x256xbf16>
    %c0_5 = arith.constant 0 : index
    %c0_6 = arith.constant 0 : index
    %9 = vector.load %arg4[%c0_5, %c0_6] : memref<256x256xbf16, #tpu.memory_space<vmem>>, vector<256x256xbf16>
    %cst_7 = arith.constant dense<0.000000e+00> : vector<16x256xf32>
    %10 = tpu.matmul %8, %9, %cst_7 {dimension_numbers = #tpu.dot_dimension_numbers<[1], [0], [0], [1], [0, 0, 1, 1], [], []>} : vector<16x256xbf16>, vector<256x256xbf16>, vector<16x256xf32> -> vector<16x256xf32>
    %c0_8 = arith.constant 0 : index
    %c0_9 = arith.constant 0 : index
    %11 = vector.load %arg5[%c0_8, %c0_9] : memref<1x256xf32, #tpu.memory_space<vmem>>, vector<1x256xf32>
    %12 = vector.broadcast %11 : vector<1x256xf32> to vector<16x256xf32>
    %13 = arith.addf %10, %12 : vector<16x256xf32>
    %14 = arith.truncf %13 : vector<16x256xf32> to vector<16x256xbf16>
    %15 = math.tanh %14 : vector<16x256xbf16>
    %c0_10 = arith.constant 0 : index
    %c0_11 = arith.constant 0 : index
    %16 = vector.load %arg6[%c0_10, %c0_11] : memref<256x256xbf16, #tpu.memory_space<vmem>>, vector<256x256xbf16>
    %cst_12 = arith.constant dense<0.000000e+00> : vector<16x256xf32>
    %17 = tpu.matmul %15, %16, %cst_12 {dimension_numbers = #tpu.dot_dimension_numbers<[1], [0], [0], [1], [0, 0, 1, 1], [], []>} : vector<16x256xbf16>, vector<256x256xbf16>, vector<16x256xf32> -> vector<16x256xf32>
    %c0_13 = arith.constant 0 : index
    %c0_14 = arith.constant 0 : index
    %18 = vector.load %arg7[%c0_13, %c0_14] : memref<1x256xf32, #tpu.memory_space<vmem>>, vector<1x256xf32>
    %19 = vector.broadcast %18 : vector<1x256xf32> to vector<16x256xf32>
    %20 = arith.addf %17, %19 : vector<16x256xf32>
    %c0_15 = arith.constant 0 : index
    %c0_16 = arith.constant 0 : index
    %21 = vector.load %arg8[%c0_15, %c0_16] : memref<16x256xf32, #tpu.memory_space<vmem>>, vector<16x256xf32>
    tpu.vector_store %arg8[%c0_15, %c0_16], %20 {strides = array<i32>} : memref<16x256xf32, #tpu.memory_space<vmem>>, vector<16x256xf32>,
    return
  }
  func.func @transform_0(%arg0: i32) -> (i32, i32) {
    %c0_i32 = arith.constant 0 : i32
    %c0_i32_0 = arith.constant 0 : i32
    return %arg0, %c0_i32 : i32, i32
  }
  func.func @transform_1(%arg0: i32) -> (i32, i32) {
    %c0_i32 = arith.constant 0 : i32
    %c0_i32_0 = arith.constant 0 : i32
    %c0_i32_1 = arith.constant 0 : i32
    return %c0_i32, %c0_i32_0 : i32, i32
  }
  func.func @transform_2(%arg0: i32) -> (i32, i32) {
    %c0_i32 = arith.constant 0 : i32
    %c0_i32_0 = arith.constant 0 : i32
    %c0_i32_1 = arith.constant 0 : i32
    return %c0_i32, %c0_i32_0 : i32, i32
  }
  func.func @transform_3(%arg0: i32) -> (i32, i32) {
    %c0_i32 = arith.constant 0 : i32
    %c0_i32_0 = arith.constant 0 : i32
    %c0_i32_1 = arith.constant 0 : i32
    return %c0_i32, %c0_i32_0 : i32, i32
  }
  func.func @transform_4(%arg0: i32) -> (i32, i32) {
    %c0_i32 = arith.constant 0 : i32
    %c0_i32_0 = arith.constant 0 : i32
    %c0_i32_1 = arith.constant 0 : i32
    return %c0_i32, %c0_i32_0 : i32, i32
  }
  func.func @transform_5(%arg0: i32) -> (i32, i32) {
    %c0_i32 = arith.constant 0 : i32
    %c0_i32_0 = arith.constant 0 : i32
    %c0_i32_1 = arith.constant 0 : i32
    return %c0_i32, %c0_i32_0 : i32, i32
  }
  func.func @transform_6(%arg0: i32) -> (i32, i32) {
    %c0_i32 = arith.constant 0 : i32
    %c0_i32_0 = arith.constant 0 : i32
    %c0_i32_1 = arith.constant 0 : i32
    return %c0_i32, %c0_i32_0 : i32, i32
  }
  func.func @transform_7(%arg0: i32) -> (i32, i32) {
    %c0_i32 = arith.constant 0 : i32
    %c0_i32_0 = arith.constant 0 : i32
    return %arg0, %c0_i32 : i32, i32
  }
}

</mosaic_0001>

<bundles_post_ra>
// kernel: decoder_forward.1
= control target key start
LH: loop header
LB: loop body
LE: loop exit
PB: predicated region body
PF: predicated region fallthrough
CT: control target
= control target key end

     0   :  { %12 = vsyncpa [#allocation3], 0  ;;  %s1080_s0 = inlined_call_operand.vmem [shape: f32[16,85], index: 0, kind: input, shape index: {}]   ;;  %s1081_s1 = inlined_call_operand.hbm [shape: bf16[85,256], index: 1, kind: input, shape index: {}]   ;;  %s1082_s2 = inlined_call_operand.vmem [shape: f32[1,256], index: 2, kind: input, shape index: {}]   ;;  %s1083_s3 = inlined_call_operand.hbm [shape: bf16[256,256], index: 3, kind: input, shape index: {}]   ;;  %s1084_s4 = inlined_call_operand.vmem [shape: f32[1,256], index: 4, kind: input, shape index: {}]   ;;  %s1085_s5 = inlined_call_operand.hbm [shape: bf16[256,256], index: 5, kind: input, shape index: {}]   ;;  %s1086_s6 = inlined_call_operand.vmem [shape: f32[1,256], index: 6, kind: input, shape index: {}]   ;;  %s1087_s7 = inlined_call_operand.vmem [shape: f32[16,256], index: 7, kind: output, shape index: {}]  }
   0x1   :  { %13 = vsyncpa [#allocation5], 0  ;;  %s987_s24 = smov [#allocation4]   ;;  %s988_s26 = smov [#allocation2]  }
   0x2   :  { %s35_s25 = sshll.u32 %s987_s24, 4  ;;  %s21_s27 = sshll.u32 %s988_s26, 4  ;;  %s36_s25 = int_to_ptr.vmem [resolvable:$true] %s35_s25  ;;  %s22_s27 = int_to_ptr.vmem [resolvable:$true] %s21_s27 }
   0x3   :  { %s931_s28 = scalar_lea.vmem %s36_s25, 4096  ;;  %p936_p1 = scmp.lt.s32.totalorder %s36_s25, %s36_s25 }
   0x4   :  { %p932_p0 = scmp.ne.s32.totalorder %s36_s25, %s931_s28  ;;  %p937_p2 = scmp.lt.s32.totalorder %s931_s28, %s931_s28 }
   0x6   :  { %p938_p3 = por %p937_p2, %p936_p1 }
   0x8   :  { %p939_p4 = pnand %p938_p3, %p932_p0 }
   0xa   :  { %942 = shalt.err (!%p939_p4)
}
   0xb   :  { %s989_s29 = smov 128   ;;  %s990_s30 = smov 8  }
   0xc   :  { %41 = dma.hbm_to_vmem [thread:$0]  %s1083_s3, 4096, %s36_s25, [#allocation5], %s989_s29, %s989_s29, %s990_s30  }
   0xd   :  { %s951_s10 = scalar_lea.vmem %s22_s27, 1408  ;;  %p956_p6 = scmp.lt.s32.totalorder %s22_s27, %s22_s27 }
   0xe   :  { %p952_p5 = scmp.ne.s32.totalorder %s22_s27, %s951_s10  ;;  %p957_p7 = scmp.lt.s32.totalorder %s951_s10, %s951_s10 }
  0x10   :  { %p958_p8 = por %p957_p7, %p956_p6 }
  0x12   :  { %p959_p9 = pnand %p958_p8, %p952_p5 }
  0x14   :  { %962 = shalt.err (!%p959_p9)
}
  0x15   :  { %27 = dma.hbm_to_vmem [thread:$0]  %s1081_s1, 1408, %s22_s27, [#allocation3], %s989_s29, %s989_s29, %s990_s30  }
  0x16   :  { %s991_s13 = smov [#allocation6]  }
  0x17   :  { %s49_s14 = sshll.u32 %s991_s13, 4  ;;  %s50_s14 = int_to_ptr.vmem [resolvable:$true] %s49_s14 }
  0x18   :  { %s971_s15 = scalar_lea.vmem %s50_s14, 4096  ;;  %p976_p11 = scmp.lt.s32.totalorder %s50_s14, %s50_s14 }
  0x19   :  { %p972_p10 = scmp.ne.s32.totalorder %s50_s14, %s971_s15  ;;  %p977_p12 = scmp.lt.s32.totalorder %s971_s15, %s971_s15 }
  0x1b   :  { %p978_p13 = por %p977_p12, %p976_p11 }
  0x1d   :  { %p979_p0 = pnand %p978_p13, %p972_p10 }
  0x1f   :  { %982 = shalt.err (!%p979_p0)
}
  0x20   :  { %55 = dma.hbm_to_vmem [thread:$0]  %s1085_s5, 4096, %s50_s14, [#allocation5], %s989_s29, %s989_s29, %s990_s30  }
  0x21   :  { %983 = dma.done.wait [#allocation3], 1408  }
  0x22   :  { %984 = vsyncadd [#allocation3], 4294965888 }
  0x23   :  { %985 = dma.done.wait [#allocation5], 8192  }
  0x24   :  { %986 = vsyncadd [#allocation5], 4294959104  ;;  %vm153_vm0 = vcmask 1041408   ;;  %v992_v0 = vmov 0   ;;  %vm154_vm1 = vcmask 1042432   ;;  %v993_v1 = vmov 65535  }
  0x25   :  { %195 = vmatprep.mubr.bf16.mxu0 %v992_v0  ;;  %v155_v2 = vsel %vm153_vm0, 4294967295, %v993_v1  ;;  %v81_v3 = vld [vmem:[#allocation2 + $0x50] sm:$0x77]  ;;  %v804_v9 = vld [vmem:[#allocation2 + $0x44] ss:$8 sps:$4 sm:$0xff]   ;;  %vm149_vm2 = vcmask 695296  }
  0x26   :  { %v156_v4 = vsel %vm154_vm1, %v155_v2, 0  ;;  %v729_v5 = vcombine.high %v81_v3, %v81_v3  ;;  %v728_v6 = vcombine.low %v81_v3, %v81_v3  ;;  %v806_v10 = vld [vmem:[#allocation2 + $0x40] ss:$8 sps:$4 sm:$0xff]   ;;  %v807_v11 = vld [vmem:[#allocation2 + $0x34] ss:$8 sps:$4 sm:$0xff]  }
  0x27   :  { %v819_v12 = vld [vmem:[#allocation4 + $0x74] ss:$8 sps:$4 sm:$0xff]   ;;  %v821_v13 = vld [vmem:[#allocation4 + $0x70] ss:$8 sps:$4 sm:$0xff]   ;;  %v822_v14 = vld [vmem:[#allocation4 + $0x64] ss:$8 sps:$4 sm:$0xff]  }
  0x28   :  { %v161_v7 = vand.u32 %v729_v5, %v156_v4  ;;  %v158_v8 = vand.u32 %v728_v6, %v156_v4  ;;  %v809_v15 = vld [vmem:[#allocation2 + $0x30] ss:$8 sps:$4 sm:$0xff]   ;;  %414 = vmatprep.subr.bf16.mxu1 %v819_v12  ;;  %v810_v16 = vld [vmem:[#allocation2 + $0x24] ss:$8 sps:$4 sm:$0xff]   ;;  %v812_v19 = vld [vmem:[#allocation2 + $0x20] ss:$8 sps:$4 sm:$0xff]  }
  0x29   :  { %415 = vmatpush1.bf16.msra.mxu1 %v821_v13  ;;  %v824_v17 = vld [vmem:[#allocation4 + $0x60] ss:$8 sps:$4 sm:$0xff]   ;;  %v825_v18 = vld [vmem:[#allocation4 + $0x54] ss:$8 sps:$4 sm:$0xff]   ;;  %v827_v21 = vld [vmem:[#allocation4 + $0x50] ss:$8 sps:$4 sm:$0xff]  }
  0x2a   :  { %167 = vmatprep.subr.bf16.mxu0 %v161_v7  ;;  %416 = vmatprep.subr.bf16.mxu1 %v822_v14  ;;  %v813_v20 = vld [vmem:[#allocation2 + $0x14] ss:$8 sps:$4 sm:$0xff]   ;;  %v815_v23 = vld [vmem:[#allocation2 + $0x10] ss:$8 sps:$4 sm:$0xff]   ;;  %v816_v24 = vld [vmem:[#allocation2 + $0x4] ss:$8 sps:$4 sm:$0xff]  }
  0x2b   :  { %168 = vmatpush1.bf16.msra.mxu0 %v158_v8  ;;  %v828_v22 = vld [vmem:[#allocation4 + $0x44] ss:$8 sps:$4 sm:$0xff]   ;;  %v830_v25 = vld [vmem:[#allocation4 + $0x40] ss:$8 sps:$4 sm:$0xff]   ;;  %v69_v28 = vld [vmem:[%s1080_s0 + $0x8] sm:$0xff] }
  0x2c   :  { %169 = vmatprep.subr.bf16.mxu0 %v804_v9  ;;  %v818_v26 = vld [vmem:[#allocation2] ss:$8 sps:$4 sm:$0xff]   ;;  %v831_v29 = vld [vmem:[#allocation4 + $0x34] ss:$8 sps:$4 sm:$0xff]   ;;  %v834_v31 = vld [vmem:[#allocation4 + $0x24] ss:$8 sps:$4 sm:$0xff]  }
  0x2d   :  { %417 = vmatpush1.bf16.msra.mxu1 %v824_v17  ;;  %v68_v27 = vld [vmem:[%s1080_s0] sm:$0xff]  ;;  %v833_v30 = vld [vmem:[#allocation4 + $0x30] ss:$8 sps:$4 sm:$0xff]   ;;  %v837_v34 = vld [vmem:[#allocation4 + $0x14] ss:$8 sps:$4 sm:$0xff]  }
  0x2e   :  { %418 = vmatprep.subr.bf16.mxu1 %v825_v18  ;;  %v70_v32 = vpack.c.bf16 %v69_v28, %v68_v27  ;;  %v836_v33 = vld [vmem:[#allocation4 + $0x20] ss:$8 sps:$4 sm:$0xff]   ;;  %v839_v35 = vld [vmem:[#allocation4 + $0x10] ss:$8 sps:$4 sm:$0xff]   ;;  %v840_v36 = vld [vmem:[#allocation4 + $0x4] ss:$8 sps:$4 sm:$0xff]  }
  0x2f   :  { %170 = vmatpush1.bf16.msra.mxu0 %v806_v10  ;;  %v842_v37 = vld [vmem:[#allocation4] ss:$8 sps:$4 sm:$0xff]   ;;  %v843_v38 = vld [vmem:[#allocation4 + $0xf4] ss:$8 sps:$4 sm:$0xff]   ;;  %v845_v39 = vld [vmem:[#allocation4 + $0xf0] ss:$8 sps:$4 sm:$0xff]   ;;  %v84_v10 = vlaneseq }
  0x30   :  { %171 = vmatprep.subr.bf16.mxu0 %v807_v11  ;;  %v846_v40 = vld [vmem:[#allocation4 + $0xe4] ss:$8 sps:$4 sm:$0xff]   ;;  %v848_v41 = vld [vmem:[#allocation4 + $0xe0] ss:$8 sps:$4 sm:$0xff]   ;;  %v849_v42 = vld [vmem:[#allocation4 + $0xd4] ss:$8 sps:$4 sm:$0xff]  }
  0x31   :  { %419 = vmatpush1.bf16.msra.mxu1 %v827_v21  ;;  %v851_v43 = vld [vmem:[#allocation4 + $0xd0] ss:$8 sps:$4 sm:$0xff]   ;;  %v852_v44 = vld [vmem:[#allocation4 + $0xc4] ss:$8 sps:$4 sm:$0xff]   ;;  %v854_v45 = vld [vmem:[#allocation4 + $0xc0] ss:$8 sps:$4 sm:$0xff]  }
  0x32   :  { %420 = vmatprep.subr.bf16.mxu1 %v828_v22  ;;  %v855_v46 = vld [vmem:[#allocation4 + $0xb4] ss:$8 sps:$4 sm:$0xff]   ;;  %v857_v47 = vld [vmem:[#allocation4 + $0xb0] ss:$8 sps:$4 sm:$0xff]   ;;  %v858_v48 = vld [vmem:[#allocation4 + $0xa4] ss:$8 sps:$4 sm:$0xff]  }
  0x33   :  { %172 = vmatpush1.bf16.msra.mxu0 %v809_v15  ;;  %v860_v49 = vld [vmem:[#allocation4 + $0xa0] ss:$8 sps:$4 sm:$0xff]   ;;  %v861_v50 = vld [vmem:[#allocation4 + $0x94] ss:$8 sps:$4 sm:$0xff]   ;;  %v863_v51 = vld [vmem:[#allocation4 + $0x90] ss:$8 sps:$4 sm:$0xff]  }
  0x34   :  { %173 = vmatprep.subr.bf16.mxu0 %v810_v16  ;;  %v864_v52 = vld [vmem:[#allocation4 + $0x84] ss:$8 sps:$4 sm:$0xff]   ;;  %v866_v53 = vld [vmem:[#allocation4 + $0x80] ss:$8 sps:$4 sm:$0xff]   ;;  %v867_v54 = vld [vmem:[#allocation6 + $0x70] ss:$8 sps:$4 sm:$0xff]  }
  0x35   :  { %421 = vmatpush1.bf16.msra.mxu1 %v830_v25  ;;  %v869_v55 = vld [vmem:[#allocation6 + $0x74] ss:$8 sps:$4 sm:$0xff]   ;;  %v872_v56 = vld [vmem:[#allocation6 + $0x64] ss:$8 sps:$4 sm:$0xff]   ;;  %v870_v57 = vld [vmem:[#allocation6 + $0x60] ss:$8 sps:$4 sm:$0xff]  }
  0x36   :  { %422 = vmatprep.subr.bf16.mxu1 %v831_v29  ;;  %v875_v58 = vld [vmem:[#allocation6 + $0x54] ss:$8 sps:$4 sm:$0xff]   ;;  %v873_v59 = vld [vmem:[#allocation6 + $0x50] ss:$8 sps:$4 sm:$0xff]   ;;  %v878_v60 = vld [vmem:[#allocation6 + $0x44] ss:$8 sps:$4 sm:$0xff]  }
  0x37   :  { %174 = vmatpush1.bf16.msra.mxu0 %v812_v19  ;;  %v876_v61 = vld [vmem:[#allocation6 + $0x40] ss:$8 sps:$4 sm:$0xff]   ;;  %v881_v62 = vld [vmem:[#allocation6 + $0x34] ss:$8 sps:$4 sm:$0xff]   ;;  %v879_v63 = vld [vmem:[#allocation6 + $0x30] ss:$8 sps:$4 sm:$0xff]  }
  0x38   :  { %175 = vmatprep.subr.bf16.mxu0 %v813_v20  ;;  %v884_v0 = vld [vmem:[#allocation6 + $0x24] ss:$8 sps:$4 sm:$0xff]   ;;  %v882_v1 = vld [vmem:[#allocation6 + $0x20] ss:$8 sps:$4 sm:$0xff]   ;;  %v887_v2 = vld [vmem:[#allocation6 + $0x14] ss:$8 sps:$4 sm:$0xff]  }
  0x39   :  { %423 = vmatpush1.bf16.msra.mxu1 %v833_v30  ;;  %v885_v3 = vld [vmem:[#allocation6 + $0x10] ss:$8 sps:$4 sm:$0xff]   ;;  %v890_v4 = vld [vmem:[#allocation6 + $0x4] ss:$8 sps:$4 sm:$0xff]   ;;  %v888_v5 = vld [vmem:[#allocation6] ss:$8 sps:$4 sm:$0xff]  }
  0x3a   :  { %424 = vmatprep.subr.bf16.mxu1 %v834_v31  ;;  %v893_v6 = vld [vmem:[#allocation6 + $0xf4] ss:$8 sps:$4 sm:$0xff]   ;;  %v891_v7 = vld [vmem:[#allocation6 + $0xf0] ss:$8 sps:$4 sm:$0xff]   ;;  %v896_v8 = vld [vmem:[#allocation6 + $0xe4] ss:$8 sps:$4 sm:$0xff]  }
  0x3b   :  { %176 = vmatpush1.bf16.msra.mxu0 %v815_v23  ;;  %v894_v9 = vld [vmem:[#allocation6 + $0xe0] ss:$8 sps:$4 sm:$0xff]   ;;  %v85_v11 = vshrl.u32 %v84_v10, 7  ;;  %v899_v29 = vld [vmem:[#allocation6 + $0xd4] ss:$8 sps:$4 sm:$0xff]  }
  0x3c   :  { %177 = vmatprep.subr.bf16.mxu0 %v816_v24  ;;  %v82_v13 = vld [vmem:[%s1082_s2] sm:$0x3]  ;;  %v897_v30 = vld [vmem:[#allocation6 + $0xd0] ss:$8 sps:$4 sm:$0xff]   ;;  %v902_v31 = vld [vmem:[#allocation6 + $0xc4] ss:$8 sps:$4 sm:$0xff]  }
  0x3d   :  { %425 = vmatpush1.bf16.msra.mxu1 %v836_v33  ;;  %v1049_v12 = vsub.s32 0, %v85_v11  ;;  %v1054_v14 = vsub.s32 1, %v85_v11  ;;  %v905_v33 = vld [vmem:[#allocation6 + $0xb4] ss:$8 sps:$4 sm:$0xff]  }
  0x3e   :  { %426 = vmatprep.subr.bf16.mxu1 %v837_v34  ;;  %v903_v34 = vld [vmem:[#allocation6 + $0xb0] ss:$8 sps:$4 sm:$0xff]  }
  0x3f   :  { %178 = vmatpush1.bf16.msra.mxu0 %v818_v26  ;;  %v87_v16 = vrot.slane %v82_v13, %v1049_v12  ;;  %v91_v18 = vrot.slane %v82_v13, %v1054_v14 }
  0x40   :  { %665 = vmatprep.subr.bf16.mxu0 %v869_v55 }
  0x41   :  { %427 = vmatpush1.bf16.msra.mxu1 %v839_v35  ;;  %v908_v35 = vld [vmem:[#allocation6 + $0xa4] ss:$8 sps:$4 sm:$0xff]  }
  0x42   :  { %730 = vmatmul.mubr.msk.bf16.vlgmr.msra.gmra.mxu0 %vm149_vm2, %v70_v32  ;;  %428 = vmatprep.subr.bf16.mxu1 %v840_v36  ;;  %v900_v32 = vld [vmem:[#allocation6 + $0xc0] ss:$8 sps:$4 sm:$0xff]  }
  0x43   :  { %666 = vmatpush1.bf16.msra.mxu0 %v867_v54  ;;  %v906_v36 = vld [vmem:[#allocation6 + $0xa0] ss:$8 sps:$4 sm:$0xff]  }
  0x44   :  { %667 = vmatprep.subr.bf16.mxu0 %v872_v56  ;;  %v493_v56 = vld [vmem:[%s1086_s6] sm:$0x3] }
  0x45   :  { %429 = vmatpush1.bf16.msra.mxu1 %v842_v37  ;;  %v911_v37 = vld [vmem:[#allocation6 + $0x94] ss:$8 sps:$4 sm:$0xff]  }
  0x46   :  { %430 = vmatprep.subr.bf16.mxu1 %v843_v38  ;;  %v909_v38 = vld [vmem:[#allocation6 + $0x90] ss:$8 sps:$4 sm:$0xff]  }
  0x47   :  { %668 = vmatpush1.bf16.msra.mxu0 %v870_v57  ;;  %v498_v57 = vrot.slane %v493_v56, %v1049_v12 }
  0x48   :  { %669 = vmatprep.subr.bf16.mxu0 %v875_v58  ;;  %v502_v58 = vrot.slane %v493_v56, %v1054_v14 }
  0x49   :  { %431 = vmatpush2.bf16.msra.mxu1 %v845_v39  ;;  %v914_v39 = vld [vmem:[#allocation6 + $0x84] ss:$8 sps:$4 sm:$0xff]  }
  0x4a   :  { %432 = vmatprep.subr.bf16.mxu1 %v846_v40  ;;  %v912_v40 = vld [vmem:[#allocation6 + $0x80] ss:$8 sps:$4 sm:$0xff]  }
  0x4b   :  { %670 = vmatpush1.bf16.msra.mxu0 %v873_v59 }
  0x4c   :  { %671 = vmatprep.subr.bf16.mxu0 %v878_v60 }
  0x4d   :  { %433 = vmatpush2.bf16.msra.mxu1 %v848_v41  ;;  %v242_v41 = vld [vmem:[%s1084_s4] sm:$0x3] }
  0x4e   :  { %434 = vmatprep.subr.bf16.mxu1 %v849_v42 }
  0x4f   :  { %672 = vmatpush1.bf16.msra.mxu0 %v876_v61 }
  0x50   :  { %673 = vmatprep.subr.bf16.mxu0 %v881_v62 }
  0x51   :  { %435 = vmatpush2.bf16.msra.mxu1 %v851_v43  ;;  %v247_v43 = vrot.slane %v242_v41, %v1049_v12 }
  0x52   :  { %436 = vmatprep.subr.bf16.mxu1 %v852_v44 }
  0x53   :  { %674 = vmatpush1.bf16.msra.mxu0 %v879_v63 }
  0x54   :  { %675 = vmatprep.subr.bf16.mxu0 %v884_v0 }
  0x55   :  { %437 = vmatpush2.bf16.msra.mxu1 %v854_v45  ;;  %v251_v45 = vrot.slane %v242_v41, %v1054_v14 }
  0x56   :  { %438 = vmatprep.subr.bf16.mxu1 %v855_v46 }
  0x57   :  { %676 = vmatpush1.bf16.msra.mxu0 %v882_v1 }
  0x58   :  { %677 = vmatprep.subr.bf16.mxu0 %v887_v2 }
  0x59   :  { %439 = vmatpush2.bf16.msra.mxu1 %v857_v47 }
  0x5a   :  { %440 = vmatprep.subr.bf16.mxu1 %v858_v48 }
  0x5b   :  { %678 = vmatpush1.bf16.msra.mxu0 %v885_v3 }
  0x5c   :  { %679 = vmatprep.subr.bf16.mxu0 %v890_v4 }
  0x5d   :  { %441 = vmatpush2.bf16.msra.mxu1 %v860_v49 }
  0x5e   :  { %442 = vmatprep.subr.bf16.mxu1 %v861_v50 }
  0x5f   :  { %680 = vmatpush1.bf16.msra.mxu0 %v888_v5 }
  0x60   :  { %681 = vmatprep.subr.bf16.mxu0 %v893_v6 }
  0x61   :  { %443 = vmatpush2.bf16.msra.mxu1 %v863_v51 }
  0x62   :  { %444 = vmatprep.subr.bf16.mxu1 %v864_v52 }
  0x63   :  { %682 = vmatpush2.bf16.msra.mxu0 %v891_v7 }
  0x64   :  { %683 = vmatprep.subr.bf16.mxu0 %v896_v8 }
  0x65   :  { %445 = vmatpush2.bf16.msra.mxu1 %v866_v53 }
  0x67   :  { %684 = vmatpush2.bf16.msra.mxu0 %v894_v9 }
  0x68   :  { %685 = vmatprep.subr.bf16.mxu0 %v899_v29 }
  0x6b   :  { %686 = vmatpush2.bf16.msra.mxu0 %v897_v30 }
  0x6c   :  { %687 = vmatprep.subr.bf16.mxu0 %v902_v31 }
  0x6f   :  { %688 = vmatpush2.bf16.msra.mxu0 %v900_v32 }
  0x70   :  { %689 = vmatprep.subr.bf16.mxu0 %v905_v33 }
  0x73   :  { %690 = vmatpush2.bf16.msra.mxu0 %v903_v34 }
  0x74   :  { %691 = vmatprep.subr.bf16.mxu0 %v908_v35 }
  0x77   :  { %692 = vmatpush2.bf16.msra.mxu0 %v906_v36 }
  0x78   :  { %693 = vmatprep.subr.bf16.mxu0 %v911_v37 }
  0x7b   :  { %694 = vmatpush2.bf16.msra.mxu0 %v909_v38 }
  0x7c   :  { %695 = vmatprep.subr.bf16.mxu0 %v914_v39 }
  0x7f   :  { %696 = vmatpush2.bf16.msra.mxu0 %v912_v40 }
 0x102   :  { %v197_v15 = vpop.f32.mrf.mxu0 }
 0x103   :  { %v198_v21 = vadd.f32 %v197_v15, %v87_v16 }
 0x104   :  { %v199_v17 = vpop.f32.mrf.mxu0 }
 0x105   :  { %v200_v23 = vadd.f32 %v199_v17, %v91_v18 }
 0x106   :  { %v201_v19 = vpop.f32.mrf.mxu0 }
 0x107   :  { %v202_v20 = vadd.f32 %v201_v19, %v87_v16 }
 0x108   :  { %v203_v22 = vpop.f32.mrf.mxu0 }
 0x109   :  { %v204_v24 = vadd.f32 %v203_v22, %v91_v18  ;;  %v206_v25 = vpack.c.bf16 %v202_v20, %v198_v21 }
 0x10b   :  { %v207_v26 = vpack.c.bf16 %v204_v24, %v200_v23 }
 0x10d   :  { %915 = vtanh.bf16 %v207_v26 }
 0x10e   :  { %917 = vtanh.bf16 %v206_v25 }
 0x11b   :  { %v916_v27 = vpop.eup %915 }
 0x11c   :  { %v918_v28 = vpop.eup %917  ;;  %446 = vmatprep.mubr.bf16.mxu1 %v916_v27 }
 0x11d   :  { %447 = vmatmul.mubr.bf16.vlgmr.msra.gmra.mxu1 %v918_v28 }
 0x1dd   :  { %v448_v42 = vpop.f32.mrf.mxu1 }
 0x1de   :  { %v449_v48 = vadd.f32 %v448_v42, %v247_v43 }
 0x1df   :  { %v450_v44 = vpop.f32.mrf.mxu1 }
 0x1e0   :  { %v451_v50 = vadd.f32 %v450_v44, %v251_v45 }
 0x1e1   :  { %v452_v46 = vpop.f32.mrf.mxu1 }
 0x1e2   :  { %v453_v47 = vadd.f32 %v452_v46, %v247_v43 }
 0x1e3   :  { %v454_v49 = vpop.f32.mrf.mxu1 }
 0x1e4   :  { %v455_v51 = vadd.f32 %v454_v49, %v251_v45  ;;  %v457_v52 = vpack.c.bf16 %v453_v47, %v449_v48 }
 0x1e6   :  { %v458_v53 = vpack.c.bf16 %v455_v51, %v451_v50 }
 0x1e8   :  { %919 = vtanh.bf16 %v458_v53 }
 0x1e9   :  { %921 = vtanh.bf16 %v457_v52 }
 0x1f6   :  { %v920_v54 = vpop.eup %919 }
 0x1f7   :  { %v922_v55 = vpop.eup %921  ;;  %697 = vmatprep.mubr.bf16.mxu0 %v920_v54 }
 0x1f8   :  { %698 = vmatmul.mubr.bf16.vlgmr.msra.gmra.mxu0 %v922_v55 }
 0x2b8   :  { %v699_v59 = vpop.f32.mrf.mxu0 }
 0x2b9   :  { %v700_v60 = vadd.f32 %v699_v59, %v498_v57 }
 0x2ba   :  { %v701_v61 = vpop.f32.mrf.mxu0 }
 0x2bb   :  { %708 = vst [vmem:[%s1087_s7] sm:$0xff] %v700_v60  ;;  %v702_v62 = vadd.f32 %v701_v61, %v502_v58 }
 0x2bc   :  { %v703_v63 = vpop.f32.mrf.mxu0 }
 0x2bd   :  { %709 = vst [vmem:[%s1087_s7 + $0x8] sm:$0xff] %v702_v62  ;;  %v704_v0 = vadd.f32 %v703_v63, %v498_v57 }
 0x2be   :  { %v705_v1 = vpop.f32.mrf.mxu0 }
 0x2bf   :  { %710 = vst [vmem:[%s1087_s7 + $0x10] sm:$0xff] %v704_v0  ;;  %v706_v2 = vadd.f32 %v705_v1, %v502_v58 }
 0x2c1   :  { %711 = vst [vmem:[%s1087_s7 + $0x18] sm:$0xff] %v706_v2 }
 0x2c2   :  { %716 = vsyncpa [#allocation3], 1 }
 0x2c3   :  { %717 = vsyncpa [#allocation5], 1 }

</bundles_post_ra>
